<compile_context>
chip_gen: v7x
topology: tpu7x:2x2x1
jax: 0.10.0
libtpu: 0.0.40
codegen_flags: <defaults>
</compile_context>

<pallas_src>
import math
import numpy as np
import jax
import jax.numpy as jnp
from jax.experimental import pallas as pl
from jax.experimental.pallas import tpu as pltpu


_THETA = 2.0 * math.pi / 3.0     # 2*pi/3
_SQRT3 = math.sqrt(3.0)
_COS2 = math.cos(2.0)            # Re(exp(-2j))
_SIN2 = math.sin(2.0)            # -Im(exp(-2j)) = sin(2)


def _axis_weights(delta):
    """Real 3-tap Fourier-shift weights along one axis.

    w[u] = (1/3) * sum_k exp(i*THETA*((1-u)*k + n[k]*delta)), n = ifftshift([-1,0,1]).
    Imaginary parts vanish identically, and by angle addition only cos(THETA*delta) and
    sin(THETA*delta) are needed (2 transcendentals per axis per pixel).
    """
    a = _THETA * delta
    c = jnp.cos(a)
    s = jnp.sin(a)
    third = 1.0 / 3.0
    w0 = (1.0 - c - _SQRT3 * s) * third
    w1 = (1.0 + 2.0 * c) * third
    w2 = (1.0 - c + _SQRT3 * s) * third
    return w0, w1, w2


def _make_kernel(strict):
    def kernel(dxy_ref, p0, p1, p2, p3, p4, p5, p6, p7, p8, out_ref):
        # tap k = 3*u + v : x/width offset = u-1, y/height offset = v-1; each (C, T)
        taps = (p0, p1, p2, p3, p4, p5, p6, p7, p8)
        dx = dxy_ref[0:1, :].astype(jnp.float32)   # (1, T) -> broadcast across sublanes
        dy = dxy_ref[1:2, :].astype(jnp.float32)

        wx = _axis_weights(dx)   # pairs with the x / width offset (u)
        wy = _axis_weights(dy)   # pairs with the y / height offset (v)

        # Separable real 3x3 weighted reduction: sum_u wx[u] * (sum_v wy[v] * P[u,v]).
        acc = None
        for u in range(3):
            row = None
            for v in range(3):
                term = wy[v] * taps[3 * u + v][...].astype(jnp.float32)
                row = term if row is None else row + term
            term = wx[u] * row
            acc = term if acc is None else acc + term

        if strict:
            # |exp(-2j) * acc| == |acc| because acc is real.
            out_ref[...] = jnp.abs(acc).astype(out_ref.dtype)
        else:
            c = acc.shape[0]
            out_ref[0:c, :] = (_COS2 * acc).astype(out_ref.dtype)          # real part
            out_ref[c:2 * c, :] = ((-_SIN2) * acc).astype(out_ref.dtype)   # imag part

    return kernel


def _gather_taps(image, offsetx, offsety, n_pad):
    """Integer part of the warp: gather the 9 shifted taps, channels-major, flat pixels.

    Returns nine (C, n_pad) arrays (zero outside image bounds and in the pad tail) plus a
    (2, n_pad) array of fractional (dx, dy). Padding is applied to the cheap index/offset
    vectors so the gathers emit the padded layout directly (no patch-sized pad copy).
    """
    B, H, W, C = image.shape
    N = B * H * W
    pad = n_pad - N

    # torch's .to(int64) truncates toward zero; keep that split (do NOT change to floor).
    ox_int = jnp.trunc(offsetx).astype(jnp.int32)
    oy_int = jnp.trunc(offsety).astype(jnp.int32)
    dx = (offsetx - ox_int.astype(offsetx.dtype)).astype(jnp.float32).reshape(-1)
    dy = (offsety - oy_int.astype(offsety.dtype)).astype(jnp.float32).reshape(-1)

    bb = jnp.broadcast_to(jnp.arange(B, dtype=jnp.int32)[:, None, None], (B, H, W)).reshape(-1)
    pp = jnp.broadcast_to(jnp.arange(H, dtype=jnp.int32)[None, :, None], (B, H, W)).reshape(-1)
    qq = jnp.broadcast_to(jnp.arange(W, dtype=jnp.int32)[None, None, :], (B, H, W)).reshape(-1)
    oxf = ox_int.reshape(-1)
    oyf = oy_int.reshape(-1)
    live = None

    if pad:
        zi = jnp.zeros((pad,), jnp.int32)
        zf = jnp.zeros((pad,), jnp.float32)
        bb = jnp.concatenate([bb, zi])
        pp = jnp.concatenate([pp, zi])
        qq = jnp.concatenate([qq, zi])
        oxf = jnp.concatenate([oxf, zi])
        oyf = jnp.concatenate([oyf, zi])
        dx = jnp.concatenate([dx, zf])
        dy = jnp.concatenate([dy, zf])
        live = jnp.concatenate([jnp.ones((N,), jnp.bool_), jnp.zeros((pad,), jnp.bool_)])

    # Channels-major view so each gather lands directly in the (C, N) kernel layout.
    img_cf = jnp.transpose(image, (3, 0, 1, 2))   # (C, B, H, W)

    taps = []
    for u in range(3):            # x / width offset axis
        for v in range(3):        # y / height offset axis
            yy = pp + (v - 1) + oyf
            xx = qq + (u - 1) + oxf
            valid = (yy >= 0) & (yy < H) & (xx >= 0) & (xx < W)
            if live is not None:
                valid = valid & live
            vals = img_cf[:, bb, jnp.clip(yy, 0, H - 1), jnp.clip(xx, 0, W - 1)]  # (C, n_pad)
            taps.append(jnp.where(valid[None, :], vals, jnp.zeros((), image.dtype)))

    dxy = jnp.stack([dx, dy], axis=0)             # (2, n_pad)
    return taps, dxy


def _choose_tile(n, requested=None):
    """Pixels (lanes) per grid step: multiple of 128; ~8K for big problems (~2.8 MB of
    per-step traffic, ~6 MiB double-buffered VMEM at C=8 f32); >=2 steps when possible
    so v7x's two TensorCores both get work."""
    n128 = ((n + 127) // 128) * 128
    if requested is not None:
        return max(128, (min(requested, n128) // 128) * 128)
    tile = min(8192, n128)
    if tile >= n128 and n128 > 128:
        tile = ((n128 // 2 + 127) // 128) * 128
    return max(128, tile)


def fourier_warp_single_image(image, offsetx, offsety, *, strict=False, tile=None):
    B, H, W, C = image.shape
    assert H == W, "the torch module's meshgrid/reshape trick assumes square spatial dims"
    N = B * H * W

    tile = _choose_tile(N, tile)
    n_pad = pl.cdiv(N, tile) * tile
    grid = (n_pad // tile,)

    taps, dxy = _gather_taps(image, offsetx, offsety, n_pad)

    out_ch = C if strict else 2 * C
    tap_spec = pl.BlockSpec((C, tile), lambda i: (0, i))

    out = pl.pallas_call(
        _make_kernel(strict),
        out_shape=jax.ShapeDtypeStruct((out_ch, n_pad), image.dtype),
        grid_spec=pltpu.PrefetchScalarGridSpec(
            num_scalar_prefetch=0,
            grid=grid,
            in_specs=[pl.BlockSpec((2, tile), lambda i: (0, i))] + [tap_spec] * 9,
            out_specs=pl.BlockSpec((out_ch, tile), lambda i: (0, i)),
        ),
        compiler_params=pltpu.CompilerParams(
            dimension_semantics=("parallel",),
            vmem_limit_bytes=48 * 1024 * 1024,
            # Let XLA fuse the gather/mask producers into the kernel's input loads so the
            # (9, C, N) tap data need not take an extra HBM round trip where possible.
            allow_input_fusion=[True] * 10,
        ),
    )(dxy, *taps)

    out = out[:, :N]
    if strict:
        return jnp.transpose(out.reshape(C, B, H, W), (1, 2, 3, 0))
    return jnp.transpose(out.reshape(2, C, B, H, W), (2, 3, 4, 0, 1)).reshape(B, H, W, 2 * C)


def _reference_fft(image, offsetx, offsety):
    """Pure-JAX reference that mirrors the torch fftn/ifftn path exactly (strict=False)."""
    B, H, W, C = image.shape
    ox_int = jnp.trunc(offsetx).astype(jnp.int32)
    oy_int = jnp.trunc(offsety).astype(jnp.int32)
    dx = (offsetx - ox_int.astype(offsetx.dtype)).astype(jnp.float32)
    dy = (offsety - oy_int.astype(offsety.dtype)).astype(jnp.float32)

    pp = jnp.arange(H, dtype=jnp.int32).reshape(1, H, 1)
    qq = jnp.arange(W, dtype=jnp.int32).reshape(1, 1, W)
    bb = jnp.arange(B, dtype=jnp.int32).reshape(B, 1, 1)
    taps = []
    for u in range(3):
        for v in range(3):
            yy = pp + (v - 1) + oy_int
            xx = qq + (u - 1) + ox_int
            valid = (yy >= 0) & (yy < H) & (xx >= 0) & (xx < W)
            vals = image[bb, jnp.clip(yy, 0, H - 1), jnp.clip(xx, 0, W - 1), :]
            taps.append(jnp.where(valid[..., None], vals, 0.0))
    sp = jnp.stack(taps, axis=0).reshape(3, 3, B, H, W, C)
    sp = jnp.transpose(sp, (0, 1, 5, 2, 3, 4)).astype(jnp.complex64)      # (3,3,C,B,H,W)

    F = jnp.fft.fftn(sp, axes=(0, 1, 2))
    narr = jnp.array([0.0, 1.0, -1.0], jnp.float32)                       # ifftshift([-1,0,1])
    nh = narr.reshape(1, 3, 1, 1, 1, 1)                                   # pairs with offsety
    nw = narr.reshape(3, 1, 1, 1, 1, 1)                                   # pairs with offsetx
    K = jnp.exp(1j * 2.0 * jnp.pi * (dy.reshape(1, 1, 1, B, H, W) * nh
                                     + dx.reshape(1, 1, 1, B, H, W) * nw) / 3.0)
    back = jnp.fft.ifftn(K * F, axes=(0, 1, 2)) * np.exp(-1j * 2.0)
    pf = jnp.transpose(back[1, 1], (1, 2, 3, 0))                          # (B,H,W,C) complex
    return jnp.concatenate([pf.real, pf.imag], axis=-1).astype(image.dtype)


if __name__ == "__main__":
    key = jax.random.PRNGKey(0)
    k1, k2, k3 = jax.random.split(key, 3)
    B, H, W, C = 2, 16, 16, 8
    image = jax.random.normal(k1, (B, H, W, C), dtype=jnp.float32)
    offsetx = jax.random.uniform(k2, (B, H, W), jnp.float32, minval=-2.5, maxval=2.5)
    offsety = jax.random.uniform(k3, (B, H, W), jnp.float32, minval=-2.5, maxval=2.5)

    warp = jax.jit(lambda im, ox, oy: fourier_warp_single_image(im, ox, oy))
    out = jax.block_until_ready(warp(image, offsetx, offsety))
    assert out.shape == (B, H, W, 2 * C) and out.dtype == jnp.float32

    ref = jax.block_until_ready(_reference_fft(image, offsetx, offsety))
    np.testing.assert_allclose(np.asarray(out), np.asarray(ref), atol=2e-3, rtol=2e-3)

    # strict=True path (magnitude fused in-kernel).
    warp_s = jax.jit(lambda im, ox, oy: fourier_warp_single_image(im, ox, oy, strict=True))
    out_s = jax.block_until_ready(warp_s(image, offsetx, offsety))
    ref_np = np.asarray(ref)
    ref_abs = np.sqrt(ref_np[..., :C] ** 2 + ref_np[..., C:] ** 2)
    np.testing.assert_allclose(np.asarray(out_s), ref_abs, atol=2e-3, rtol=2e-3)

    print("KERNEL_OK")
</pallas_src>

<mosaic_0001>
module attributes {stable_mosaic.version = 11 : i64} {
  func.func @kernel(%arg0: i32, %arg1: memref<2x256xf32, #tpu.memory_space<vmem>>, %arg2: memref<8x256xf32, #tpu.memory_space<vmem>>, %arg3: memref<8x256xf32, #tpu.memory_space<vmem>>, %arg4: memref<8x256xf32, #tpu.memory_space<vmem>>, %arg5: memref<8x256xf32, #tpu.memory_space<vmem>>, %arg6: memref<8x256xf32, #tpu.memory_space<vmem>>, %arg7: memref<8x256xf32, #tpu.memory_space<vmem>>, %arg8: memref<8x256xf32, #tpu.memory_space<vmem>>, %arg9: memref<8x256xf32, #tpu.memory_space<vmem>>, %arg10: memref<8x256xf32, #tpu.memory_space<vmem>>, %arg11: memref<16x256xf32, #tpu.memory_space<vmem>>) attributes {dimension_semantics = [#tpu.dimension_semantics<parallel>], iteration_bounds = array<i64: 2>, scalar_prefetch = 0 : i64, scratch_operands = 0 : i64, tpu.core_type = #tpu.core_type<tc>, window_params = [{transform_indices = @transform_0, window_bounds = array<i64: 2, 256>}, {transform_indices = @transform_1, window_bounds = array<i64: 8, 256>}, {transform_indices = @transform_2, window_bounds = array<i64: 8, 256>}, {transform_indices = @transform_3, window_bounds = array<i64: 8, 256>}, {transform_indices = @transform_4, window_bounds = array<i64: 8, 256>}, {transform_indices = @transform_5, window_bounds = array<i64: 8, 256>}, {transform_indices = @transform_6, window_bounds = array<i64: 8, 256>}, {transform_indices = @transform_7, window_bounds = array<i64: 8, 256>}, {transform_indices = @transform_8, window_bounds = array<i64: 8, 256>}, {transform_indices = @transform_9, window_bounds = array<i64: 8, 256>}, {transform_indices = @transform_10, window_bounds = array<i64: 16, 256>}]} {
    %c0 = arith.constant 0 : index
    %c0_0 = arith.constant 0 : index
    %0 = vector.load %arg1[%c0, %c0_0] : memref<2x256xf32, #tpu.memory_space<vmem>>, vector<1x256xf32>
    %c1 = arith.constant 1 : index
    %c0_1 = arith.constant 0 : index
    %1 = vector.load %arg1[%c1, %c0_1] : memref<2x256xf32, #tpu.memory_space<vmem>>, vector<1x256xf32>
    %cst = arith.constant 2.09439516 : f32
    %2 = vector.broadcast %cst : f32 to vector<1x256xf32>
    %3 = arith.mulf %2, %0 : vector<1x256xf32>
    %4 = math.cos %3 : vector<1x256xf32>
    %5 = math.sin %3 : vector<1x256xf32>
    %cst_2 = arith.constant 1.000000e+00 : f32
    %6 = vector.broadcast %cst_2 : f32 to vector<1x256xf32>
    %7 = arith.subf %6, %4 : vector<1x256xf32>
    %cst_3 = arith.constant 1.73205078 : f32
    %8 = vector.broadcast %cst_3 : f32 to vector<1x256xf32>
    %9 = arith.mulf %8, %5 : vector<1x256xf32>
    %10 = arith.subf %7, %9 : vector<1x256xf32>
    %cst_4 = arith.constant 0.333333343 : f32
    %11 = vector.broadcast %cst_4 : f32 to vector<1x256xf32>
    %12 = arith.mulf %10, %11 : vector<1x256xf32>
    %cst_5 = arith.constant 2.000000e+00 : f32
    %13 = vector.broadcast %cst_5 : f32 to vector<1x256xf32>
    %14 = arith.mulf %13, %4 : vector<1x256xf32>
    %cst_6 = arith.constant 1.000000e+00 : f32
    %15 = vector.broadcast %cst_6 : f32 to vector<1x256xf32>
    %16 = arith.addf %15, %14 : vector<1x256xf32>
    %cst_7 = arith.constant 0.333333343 : f32
    %17 = vector.broadcast %cst_7 : f32 to vector<1x256xf32>
    %18 = arith.mulf %16, %17 : vector<1x256xf32>
    %cst_8 = arith.constant 1.000000e+00 : f32
    %19 = vector.broadcast %cst_8 : f32 to vector<1x256xf32>
    %20 = arith.subf %19, %4 : vector<1x256xf32>
    %cst_9 = arith.constant 1.73205078 : f32
    %21 = vector.broadcast %cst_9 : f32 to vector<1x256xf32>
    %22 = arith.mulf %21, %5 : vector<1x256xf32>
    %23 = arith.addf %20, %22 : vector<1x256xf32>
    %cst_10 = arith.constant 0.333333343 : f32
    %24 = vector.broadcast %cst_10 : f32 to vector<1x256xf32>
    %25 = arith.mulf %23, %24 : vector<1x256xf32>
    %cst_11 = arith.constant 2.09439516 : f32
    %26 = vector.broadcast %cst_11 : f32 to vector<1x256xf32>
    %27 = arith.mulf %26, %1 : vector<1x256xf32>
    %28 = math.cos %27 : vector<1x256xf32>
    %29 = math.sin %27 : vector<1x256xf32>
    %cst_12 = arith.constant 1.000000e+00 : f32
    %30 = vector.broadcast %cst_12 : f32 to vector<1x256xf32>
    %31 = arith.subf %30, %28 : vector<1x256xf32>
    %cst_13 = arith.constant 1.73205078 : f32
    %32 = vector.broadcast %cst_13 : f32 to vector<1x256xf32>
    %33 = arith.mulf %32, %29 : vector<1x256xf32>
    %34 = arith.subf %31, %33 : vector<1x256xf32>
    %cst_14 = arith.constant 0.333333343 : f32
    %35 = vector.broadcast %cst_14 : f32 to vector<1x256xf32>
    %36 = arith.mulf %34, %35 : vector<1x256xf32>
    %cst_15 = arith.constant 2.000000e+00 : f32
    %37 = vector.broadcast %cst_15 : f32 to vector<1x256xf32>
    %38 = arith.mulf %37, %28 : vector<1x256xf32>
    %cst_16 = arith.constant 1.000000e+00 : f32
    %39 = vector.broadcast %cst_16 : f32 to vector<1x256xf32>
    %40 = arith.addf %39, %38 : vector<1x256xf32>
    %cst_17 = arith.constant 0.333333343 : f32
    %41 = vector.broadcast %cst_17 : f32 to vector<1x256xf32>
    %42 = arith.mulf %40, %41 : vector<1x256xf32>
    %cst_18 = arith.constant 1.000000e+00 : f32
    %43 = vector.broadcast %cst_18 : f32 to vector<1x256xf32>
    %44 = arith.subf %43, %28 : vector<1x256xf32>
    %cst_19 = arith.constant 1.73205078 : f32
    %45 = vector.broadcast %cst_19 : f32 to vector<1x256xf32>
    %46 = arith.mulf %45, %29 : vector<1x256xf32>
    %47 = arith.addf %44, %46 : vector<1x256xf32>
    %cst_20 = arith.constant 0.333333343 : f32
    %48 = vector.broadcast %cst_20 : f32 to vector<1x256xf32>
    %49 = arith.mulf %47, %48 : vector<1x256xf32>
    %c0_21 = arith.constant 0 : index
    %c0_22 = arith.constant 0 : index
    %50 = vector.load %arg2[%c0_21, %c0_22] : memref<8x256xf32, #tpu.memory_space<vmem>>, vector<8x256xf32>
    %51 = vector.broadcast %36 : vector<1x256xf32> to vector<8x256xf32>
    %52 = arith.mulf %51, %50 : vector<8x256xf32>
    %c0_23 = arith.constant 0 : index
    %c0_24 = arith.constant 0 : index
    %53 = vector.load %arg3[%c0_23, %c0_24] : memref<8x256xf32, #tpu.memory_space<vmem>>, vector<8x256xf32>
    %54 = vector.broadcast %42 : vector<1x256xf32> to vector<8x256xf32>
    %55 = arith.mulf %54, %53 : vector<8x256xf32>
    %56 = arith.addf %52, %55 : vector<8x256xf32>
    %c0_25 = arith.constant 0 : index
    %c0_26 = arith.constant 0 : index
    %57 = vector.load %arg4[%c0_25, %c0_26] : memref<8x256xf32, #tpu.memory_space<vmem>>, vector<8x256xf32>
    %58 = vector.broadcast %49 : vector<1x256xf32> to vector<8x256xf32>
    %59 = arith.mulf %58, %57 : vector<8x256xf32>
    %60 = arith.addf %56, %59 : vector<8x256xf32>
    %61 = vector.broadcast %12 : vector<1x256xf32> to vector<8x256xf32>
    %62 = arith.mulf %61, %60 : vector<8x256xf32>
    %c0_27 = arith.constant 0 : index
    %c0_28 = arith.constant 0 : index
    %63 = vector.load %arg5[%c0_27, %c0_28] : memref<8x256xf32, #tpu.memory_space<vmem>>, vector<8x256xf32>
    %64 = vector.broadcast %36 : vector<1x256xf32> to vector<8x256xf32>
    %65 = arith.mulf %64, %63 : vector<8x256xf32>
    %c0_29 = arith.constant 0 : index
    %c0_30 = arith.constant 0 : index
    %66 = vector.load %arg6[%c0_29, %c0_30] : memref<8x256xf32, #tpu.memory_space<vmem>>, vector<8x256xf32>
    %67 = vector.broadcast %42 : vector<1x256xf32> to vector<8x256xf32>
    %68 = arith.mulf %67, %66 : vector<8x256xf32>
    %69 = arith.addf %65, %68 : vector<8x256xf32>
    %c0_31 = arith.constant 0 : index
    %c0_32 = arith.constant 0 : index
    %70 = vector.load %arg7[%c0_31, %c0_32] : memref<8x256xf32, #tpu.memory_space<vmem>>, vector<8x256xf32>
    %71 = vector.broadcast %49 : vector<1x256xf32> to vector<8x256xf32>
    %72 = arith.mulf %71, %70 : vector<8x256xf32>
    %73 = arith.addf %69, %72 : vector<8x256xf32>
    %74 = vector.broadcast %18 : vector<1x256xf32> to vector<8x256xf32>
    %75 = arith.mulf %74, %73 : vector<8x256xf32>
    %76 = arith.addf %62, %75 : vector<8x256xf32>
    %c0_33 = arith.constant 0 : index
    %c0_34 = arith.constant 0 : index
    %77 = vector.load %arg8[%c0_33, %c0_34] : memref<8x256xf32, #tpu.memory_space<vmem>>, vector<8x256xf32>
    %78 = vector.broadcast %36 : vector<1x256xf32> to vector<8x256xf32>
    %79 = arith.mulf %78, %77 : vector<8x256xf32>
    %c0_35 = arith.constant 0 : index
    %c0_36 = arith.constant 0 : index
    %80 = vector.load %arg9[%c0_35, %c0_36] : memref<8x256xf32, #tpu.memory_space<vmem>>, vector<8x256xf32>
    %81 = vector.broadcast %42 : vector<1x256xf32> to vector<8x256xf32>
    %82 = arith.mulf %81, %80 : vector<8x256xf32>
    %83 = arith.addf %79, %82 : vector<8x256xf32>
    %c0_37 = arith.constant 0 : index
    %c0_38 = arith.constant 0 : index
    %84 = vector.load %arg10[%c0_37, %c0_38] : memref<8x256xf32, #tpu.memory_space<vmem>>, vector<8x256xf32>
    %85 = vector.broadcast %49 : vector<1x256xf32> to vector<8x256xf32>
    %86 = arith.mulf %85, %84 : vector<8x256xf32>
    %87 = arith.addf %83, %86 : vector<8x256xf32>
    %88 = vector.broadcast %25 : vector<1x256xf32> to vector<8x256xf32>
    %89 = arith.mulf %88, %87 : vector<8x256xf32>
    %90 = arith.addf %76, %89 : vector<8x256xf32>
    %cst_39 = arith.constant -0.416146845 : f32
    %91 = vector.broadcast %cst_39 : f32 to vector<8x256xf32>
    %92 = arith.mulf %91, %90 : vector<8x256xf32>
    %c0_40 = arith.constant 0 : index
    %c0_41 = arith.constant 0 : index
    %93 = vector.load %arg11[%c0_40, %c0_41] : memref<16x256xf32, #tpu.memory_space<vmem>>, vector<8x256xf32>
    tpu.vector_store %arg11[%c0_40, %c0_41], %92 {strides = array<i32>} : memref<16x256xf32, #tpu.memory_space<vmem>>, vector<8x256xf32>,
    %cst_42 = arith.constant -0.909297406 : f32
    %94 = vector.broadcast %cst_42 : f32 to vector<8x256xf32>
    %95 = arith.mulf %94, %90 : vector<8x256xf32>
    %c8 = arith.constant 8 : index
    %c0_43 = arith.constant 0 : index
    %96 = vector.load %arg11[%c8, %c0_43] : memref<16x256xf32, #tpu.memory_space<vmem>>, vector<8x256xf32>
    tpu.vector_store %arg11[%c8, %c0_43], %95 {strides = array<i32>} : memref<16x256xf32, #tpu.memory_space<vmem>>, vector<8x256xf32>,
    return
  }
  func.func @transform_0(%arg0: i32) -> (i32, i32) {
    %c0_i32 = arith.constant 0 : i32
    %c0_i32_0 = arith.constant 0 : i32
    return %c0_i32, %arg0 : i32, i32
  }
  func.func @transform_1(%arg0: i32) -> (i32, i32) {
    %c0_i32 = arith.constant 0 : i32
    %c0_i32_0 = arith.constant 0 : i32
    return %c0_i32, %arg0 : i32, i32
  }
  func.func @transform_2(%arg0: i32) -> (i32, i32) {
    %c0_i32 = arith.constant 0 : i32
    %c0_i32_0 = arith.constant 0 : i32
    return %c0_i32, %arg0 : i32, i32
  }
  func.func @transform_3(%arg0: i32) -> (i32, i32) {
    %c0_i32 = arith.constant 0 : i32
    %c0_i32_0 = arith.constant 0 : i32
    return %c0_i32, %arg0 : i32, i32
  }
  func.func @transform_4(%arg0: i32) -> (i32, i32) {
    %c0_i32 = arith.constant 0 : i32
    %c0_i32_0 = arith.constant 0 : i32
    return %c0_i32, %arg0 : i32, i32
  }
  func.func @transform_5(%arg0: i32) -> (i32, i32) {
    %c0_i32 = arith.constant 0 : i32
    %c0_i32_0 = arith.constant 0 : i32
    return %c0_i32, %arg0 : i32, i32
  }
  func.func @transform_6(%arg0: i32) -> (i32, i32) {
    %c0_i32 = arith.constant 0 : i32
    %c0_i32_0 = arith.constant 0 : i32
    return %c0_i32, %arg0 : i32, i32
  }
  func.func @transform_7(%arg0: i32) -> (i32, i32) {
    %c0_i32 = arith.constant 0 : i32
    %c0_i32_0 = arith.constant 0 : i32
    return %c0_i32, %arg0 : i32, i32
  }
  func.func @transform_8(%arg0: i32) -> (i32, i32) {
    %c0_i32 = arith.constant 0 : i32
    %c0_i32_0 = arith.constant 0 : i32
    return %c0_i32, %arg0 : i32, i32
  }
  func.func @transform_9(%arg0: i32) -> (i32, i32) {
    %c0_i32 = arith.constant 0 : i32
    %c0_i32_0 = arith.constant 0 : i32
    return %c0_i32, %arg0 : i32, i32
  }
  func.func @transform_10(%arg0: i32) -> (i32, i32) {
    %c0_i32 = arith.constant 0 : i32
    %c0_i32_0 = arith.constant 0 : i32
    return %c0_i32, %arg0 : i32, i32
  }
}

</mosaic_0001>

<bundles_post_ra>
// kernel: _lambda_.2
= control target key start
LH: loop header
LB: loop body
LE: loop exit
PB: predicated region body
PF: predicated region fallthrough
CT: control target
= control target key end

     0   :  { %s3502_s0 = inlined_call_operand.vmem [shape: f32[512,8], index: 0, kind: input, shape index: {}]   ;;  %s3503_s1 = inlined_call_operand.vmem [shape: f32[512,8], index: 1, kind: input, shape index: {}]   ;;  %s3504_s2 = inlined_call_operand.vmem [shape: f32[512,8], index: 2, kind: input, shape index: {}]   ;;  %s3505_s3 = inlined_call_operand.vmem [shape: f32[512,8], index: 3, kind: input, shape index: {}]   ;;  %s3506_s4 = inlined_call_operand.vmem [shape: f32[512,8], index: 4, kind: input, shape index: {}]   ;;  %s3507_s5 = inlined_call_operand.vmem [shape: f32[512,8], index: 5, kind: input, shape index: {}]   ;;  %s3508_s6 = inlined_call_operand.vmem [shape: f32[512,8], index: 6, kind: input, shape index: {}]   ;;  %s3509_s7 = inlined_call_operand.vmem [shape: f32[512,8], index: 7, kind: input, shape index: {}]   ;;  %s3510_s8 = inlined_call_operand.vmem [shape: f32[512,8], index: 8, kind: input, shape index: {}]   ;;  %s3511_s9 = inlined_call_operand.<no memory space> [shape: f32[], index: 9, kind: input, shape index: {}]   ;;  %s3512_s10 = inlined_call_operand.vmem [shape: pred[512], index: 10, kind: input, shape index: {}]   ;;  %s3513_s11 = inlined_call_operand.vmem [shape: pred[512], index: 11, kind: input, shape index: {}]   ;;  %s3514_s12 = inlined_call_operand.vmem [shape: pred[512], index: 12, kind: input, shape index: {}]   ;;  %s3515_s13 = inlined_call_operand.vmem [shape: pred[512], index: 13, kind: input, shape index: {}]   ;;  %s3516_s14 = inlined_call_operand.vmem [shape: pred[512], index: 14, kind: input, shape index: {}]   ;;  %s3517_s15 = inlined_call_operand.vmem [shape: pred[512], index: 15, kind: input, shape index: {}]   ;;  %s3518_s16 = inlined_call_operand.vmem [shape: pred[512], index: 16, kind: input, shape index: {}]   ;;  %s3519_s17 = inlined_call_operand.vmem [shape: pred[512], index: 17, kind: input, shape index: {}]   ;;  %s3520_s18 = inlined_call_operand.vmem [shape: pred[512], index: 18, kind: input, shape index: {}]   ;;  %s3521_s19 = inlined_call_operand.vmem [shape: f32[1,512], index: 19, kind: input, shape index: {}]   ;;  %s3522_s20 = inlined_call_operand.<no memory space> [shape: f32[], index: 20, kind: input, shape index: {}]   ;;  %s3523_s21 = inlined_call_operand.vmem [shape: f32[1,512], index: 21, kind: input, shape index: {}]   ;;  %s3524_s22 = inlined_call_operand.vmem [shape: f32[16,512], index: 22, kind: output, shape index: {}]  }
   0x1   :  { %3528 = sst [smem:[#allocation26_spill]] %s3502_s0  ;;  %v2980_v0 = vstv %s3522_s20  ;;  %v2985_v1 = vstv %s3511_s9 }
   0x2   :  { %3529 = sst [smem:[#allocation27_spill]] %s3503_s1 }
   0x3   :  { %3530 = sst [smem:[#allocation28_spill]] %s3504_s2 }
   0x4   :  { %3531 = sst [smem:[#allocation29_spill]] %s3505_s3 }
   0x5   :  { %3532 = sst [smem:[#allocation30_spill]] %s3506_s4 }
   0x6   :  { %3533 = sst [smem:[#allocation31_spill]] %s3507_s5 }
   0x7   :  { %3534 = sst [smem:[#allocation32_spill]] %s3508_s6 }
   0x8   :  { %3535 = sst [smem:[#allocation33_spill]] %s3509_s7 }
   0x9   :  { %3536 = sst [smem:[#allocation34_spill]] %s3510_s8 }
   0xa   :  { %3537 = sst [smem:[#allocation35_spill]] %s3520_s18 }
   0xb   :  { %3538 = sst [smem:[#allocation36_spill]] %s3521_s19 }
   0xc   :  { %3539 = sst [smem:[#allocation37_spill]] %s3523_s21 }
   0xd   :  { %3540 = sst [smem:[#allocation38_spill]] %s3524_s22 }
   0xe   :  { %s2987_s4 = smov 0   ;;  %s2989_s0 = smov 0  }
   0xf   :  { %s2991_s23 = smov 0  }
  0x10 LB: > { %3541 = sst [smem:[#allocation23_spill]] %s2850_s0  ;;  %s3000_s9 = sadd.s32 4294967295, %s2854_s23   ;;  %s2854_s23 = sphi %s2991_s23, %s3562_s23   ;;  %s2850_s0 = sphi %s2989_s0, %s3564_s0   ;;  %s2846_s4 = sphi %s2987_s4, %s3563_s4  }
  0x11   : > { %s3002_s20 = sadd.s32 1, %s2854_s23   ;;  %s610_s5 = sadd.s32 1, %s2850_s0 }
  0x12   : > { %3542 = sst [smem:[#allocation24_spill]] %s3002_s20  ;;  %s607_s1 = ssub.s32 %s2854_s23, %s3002_s20 }
  0x13   : > { %p608_p0 = scmp.eq.s32.totalorder %s607_s1, 0  ;;  %p620_p1 = scmp.ne.s32.totalorder %s2850_s0, %s2846_s4 }
  0x14   : > { %p621_p2 = scmp.eq.s32.totalorder %s3000_s9, 1  ;;  %p2668_p3 = scmp.ge.s32.totalorder %s2854_s23, 1 }
  0x15   : > { %s3010_s24 = scalar_select %p608_p0, %s2850_s0, %s610_s5  }
  0x16   : > { %p3012_p4 = por %p621_p2, %p620_p1  ;;  %p880_p5 = scmp.lt.s32.totalorder %s2854_s23, 3 }
  0x17   : > { %3543 = sst [smem:[#allocation25_spill]] %s3010_s24 }
  0x18   : > { %p881_p6 = pnand %p2668_p3, %p880_p5 }
  0x1a   : > { %884 = sbr.rel (%p881_p6) target bundleno = 182 (0xb6), region = 100 }
  0x21   : > { %s2670_s25 = sshll.u32 %s3000_s9, 1  ;;  %v1248_v2 = vlaneseq  ;;  %s3545_s19 = sld [smem:[#allocation36_spill]]  ;;  %vm1253_vm0 = vcmask 1046528   ;;  %v2856_v37 = vmov 683565275  }
  0x22   : > { %p1063_p7 = scmp.lt.s32.totalorder %s2670_s25, 3  ;;  %s3546_s21 = sld [smem:[#allocation37_spill]]  ;;  %v2857_v39 = vmov 2475754826   ;;  %v2858_v41 = vmov 2131351028  }
  0x23   : > { %v3017_v3 = vshrl.u32 %v1248_v2, 7  ;;  %v2859_v43 = vmov 2102212464   ;;  %v2860_v45 = vmov 920167782   ;;  %s3072_s30 = sshll.u32 %s3000_s9, 8 }
  0x24   : > { %s3566_s25 = smov (!%p1063_p7, %s2670_s25), 3  ;;  %v2861_v54 = vmov 1326507024   ;;  %s1301_s23 = sshrl.u32 %s3072_s30, 9 }
  0x25   : > { %v1250_v4 = vadd.s32 8, %v3017_v3  ;;  %vm1260_vm1 = vcmp.lt.s32.totalorder %v3017_v3, 1  ;;  %s1325_s1 = sadd.s32 128, %s3072_s30  ;;  %p2694_p8 = scmp.gt.s32.totalorder %s1301_s23, 0 }
  0x26   : > { %s1304_s5 = sand.u32 511, %s3072_s30   ;;  %s1326_s26 = sshrl.u32 %s1325_s1, 9 }
  0x27   : > { %s1067_s27 = scalar_lea.vmem %s3545_s19, %s3566_s25  ;;  %vm1251_vm2 = vcmp.lt.s32.totalorder %v1250_v4, 9  ;;  %s1305_s2 = sshrl.u32 %s1304_s5, 7 }
  0x28   : > { %s1076_s29 = scalar_lea.vmem %s3546_s21, %s3566_s25  ;;  %v1246_v5 = vld [vmem:[%s1067_s27] sm:$0x1]  ;;  %v2690_v8 = vld [vmem:[%s1067_s27 + $0x1] sm:$0x1]  ;;  %s3568_s23 = smov (%p2694_p8, %s1301_s23), 0 }
  0x29   : > { %v1256_v6 = vld [vmem:[%s1076_s29] sm:$0x1]  ;;  %v1252_v7 = vsel %vm1251_vm2, %v1246_v5, %v2980_v0  ;;  %v2691_v9 = vld [vmem:[%s1076_s29 + $0x1] sm:$0x1]  ;;  %v1280_v12 = vsel %vm1251_vm2, %v2690_v8, %v2980_v0  ;;  %p2696_p9 = scmp.gt.s32.totalorder %s1326_s26, 0  ;;  %s3094_s27 = sshrl.u32 %s1305_s2, 2 }
  0x2a   : > { %v1254_v10 = vsel %vm1253_vm0, %v1252_v7, %v2980_v0  ;;  %v1261_v11 = vsel %vm1260_vm1, %v1256_v6, %v2980_v0  ;;  %v1282_v14 = vsel %vm1253_vm0, %v1280_v12, %v2980_v0  ;;  %v1290_v15 = vsel %vm1260_vm1, %v2691_v9, %v2980_v0  ;;  %s1309_s3 = sand.u32 3, %s1305_s2   ;;  %s1329_s28 = sand.u32 511, %s1325_s1  }
  0x2b   : > { %v1255_v13 = vrot.slane %v1254_v10, 7  ;;  %v1283_v16 = vrot.slane %v1282_v14, 7  ;;  %s3547_s18 = sld [smem:[#allocation35_spill]]  ;;  %s1358_s24 = scalar_lea.vmem %s3519_s17, %s3568_s23 }
  0x2c   : > { %s3570_s26 = smov (%p2696_p9, %s1326_s26), 0  ;;  %s1330_s1 = sshrl.u32 %s1329_s28, 7 }
  0x2d   : > { %v1264_v17 = vmax.f32 %v1261_v11, %v1255_v13  ;;  %v1293_v18 = vmax.f32 %v1290_v15, %v1283_v16  ;;  %s1361_s19 = scalar_lea.vmem %s1358_s24, %s3094_s27  ;;  %s3119_s0 = sshrl.u32 %s1330_s1, 2 }
  0x2e   : > { %s1383_s24 = scalar_lea.vmem %s3519_s17, %s3570_s26  ;;  %s3134_s20 = sshll.u32 %s3566_s25, 3 }
  0x2f   : > { %1267 = vst [vmem:[#allocation13] sm:$0x3] %v1264_v17  ;;  %1297 = vst [vmem:[#allocation13 + $0x2] sm:$0x3] %v1293_v18  ;;  %s3548_s8 = sld [smem:[#allocation34_spill]]  ;;  %s3551_s7 = sld [smem:[#allocation33_spill]] }
  0x30   : > { %s1536_s28 = scalar_lea.vmem %s3516_s14, %s3570_s26  ;;  %s1587_s29 = scalar_lea.vmem %s3515_s13, %s3570_s26 }
  0x31   : > { %s1307_s5 = scalar_lea.vmem %s3547_s18, %s3568_s23  ;;  %s1332_s30 = scalar_lea.vmem %s3547_s18, %s3570_s26 }
  0x32   : > { %s1310_s2 = scalar_lea.vmem %s1307_s5, %s3094_s27  ;;  %s1409_s18 = scalar_lea.vmem %s3518_s16, %s3568_s23 }
  0x33   : > { %s1335_s22 = scalar_lea.vmem %s1332_s30, %s3119_s0  ;;  %s1412_s25 = scalar_lea.vmem %s1409_s18, %s3094_s27 }
  0x34   : > { %s1460_s18 = scalar_lea.vmem %s3517_s15, %s3568_s23  ;;  %s1613_s30 = scalar_lea.vmem %s3514_s12, %s3568_s23 }
  0x35   : > { %s1463_s5 = scalar_lea.vmem %s1460_s18, %s3094_s27 }
  0x36   : > { %v1757_v19 = vld [vmem:[#allocation13] ss:$2 sm:$0x3]  ;;  %v1759_v22 = vld [vmem:[#allocation13 + $0x1] ss:$2 sm:$0x3] }
  0x37   : > { %v3037_v20 = vmul.f32 2.0943952, %v1757_v19  ;;  %v3041_v26 = vmul.f32 2.0943952, %v1759_v22 }
  0x39   : > { %v1764_v21 = vand.u32 2139095040, %v3037_v20  ;;  %v1761_v24 = vand.u32 2147483647, %v3037_v20  ;;  %v1981_v29 = vand.u32 2139095040, %v3041_v26  ;;  %v1978_v48 = vand.u32 2147483647, %v3041_v26 }
  0x3a   : > { %vm1763_vm0 = vcmp.lt.s32.totalorder %v3037_v20, 0 }
  0x3b   : > { %v1765_v23 = vshrl.u32 %v1764_v21, 23  ;;  %v1768_v27 = vand.u32 8388607, %v1761_v24  ;;  %v1982_v30 = vshrl.u32 %v1981_v29, 23  ;;  %v1985_v10 = vand.u32 8388607, %v1978_v48 }
  0x3c   : > { %vm3170_vm1 = vcmp.le.f32.partialorder %v1761_v24, 0.7853982 }
  0x3d   : > { %v2737_v25 = vadd.s32 4294967169, %v1765_v23  ;;  %v1769_v31 = vor.u32 8388608, %v1768_v27  ;;  %v2745_v35 = vadd.s32 4294967169, %v1982_v30  ;;  %v1986_v23 = vor.u32 8388608, %v1985_v10 }
  0x3f   : > { %v1771_v28 = vadd.s32 1, %v2737_v25  ;;  %v1809_v47 = vshll.u32 %v1769_v31, 8  ;;  %v1988_v59 = vadd.s32 1, %v2745_v35 }
  0x41   : > { %vm1772_vm3 = vcmp.gt.s32.totalorder %v1771_v28, 0  ;;  %vm1989_vm8 = vcmp.gt.s32.totalorder %v1988_v59, 0 }
  0x42   : > { %v1773_v32 = vsel %vm1772_vm3, %v1771_v28, 0  ;;  %v1990_v11 = vsel %vm1989_vm8, %v1988_v59, 0 }
  0x43   : > { %v1775_v33 = vand.u32 31, %v1773_v32  ;;  %v1774_v34 = vshrl.u32 %v1773_v32, 5  ;;  %v1991_v15 = vshrl.u32 %v1990_v11, 5  ;;  %v1992_v21 = vand.u32 31, %v1990_v11 }
  0x45   : > { %v1776_v36 = vsub.s32 32, %v1775_v33  ;;  %v1778_v38 = vshll.u32 %v2856_v37, %v1775_v33  ;;  %v1781_v40 = vshll.u32 %v2857_v39, %v1775_v33  ;;  %v1784_v42 = vshll.u32 %v2858_v41, %v1775_v33 }
  0x46   : > { %v1787_v44 = vshll.u32 %v2859_v43, %v1775_v33  ;;  %v1790_v46 = vshll.u32 %v2860_v45, %v1775_v33  ;;  %vm1793_vm4 = vcmp.lt.s32.totalorder %v1774_v34, 1  ;;  %vm1796_vm5 = vcmp.lt.s32.totalorder %v1774_v34, 4 }
  0x47   : > { %v1777_v49 = vshrl.u32 %v2856_v37, %v1776_v36  ;;  %v1779_v50 = vshrl.u32 %v2857_v39, %v1776_v36  ;;  %v1782_v51 = vshrl.u32 %v2858_v41, %v1776_v36  ;;  %v1785_v52 = vshrl.u32 %v2859_v43, %v1776_v36 }
  0x48   : > { %v1788_v53 = vshrl.u32 %v2860_v45, %v1776_v36  ;;  %v1791_v55 = vshrl.u32 %v2861_v54, %v1776_v36  ;;  %vm1794_vm6 = vcmp.lt.s32.totalorder %v1774_v34, 2  ;;  %vm1795_vm7 = vcmp.lt.s32.totalorder %v1774_v34, 3 }
  0x49   : > { %v1780_v56 = vor.u32 %v1779_v50, %v1778_v38  ;;  %v1783_v57 = vor.u32 %v1782_v51, %v1781_v40  ;;  %v1786_v58 = vor.u32 %v1785_v52, %v1784_v42  ;;  %vm2010_vm9 = vcmp.lt.s32.totalorder %v1991_v15, 1 }
  0x4a   : > { %v1789_v60 = vor.u32 %v1788_v53, %v1787_v44  ;;  %v1792_v61 = vor.u32 %v1791_v55, %v1790_v46  ;;  %v1993_v25 = vsub.s32 32, %v1992_v21  ;;  %v1995_v27 = vshll.u32 %v2856_v37, %v1992_v21 }
  0x4b   : > { %v1797_v62 = vsel %vm1793_vm4, %v1777_v49, %v1780_v56  ;;  %v1798_v63 = vsel %vm1796_vm5, %v1786_v58, 2102212464  ;;  %v1801_v2 = vsel %vm1793_vm4, %v1780_v56, %v1783_v57  ;;  %v1805_v4 = vsel %vm1793_vm4, %v1783_v57, %v1786_v58 }
  0x4c   : > { %v1799_v5 = vsel %vm1795_vm7, %v1783_v57, %v1798_v63  ;;  %v1802_v6 = vsel %vm1796_vm5, %v1789_v60, 920167782  ;;  %v1806_v7 = vsel %vm1796_vm5, %v1792_v61, 1326507024  ;;  %v1998_v28 = vshll.u32 %v2857_v39, %v1992_v21 }
  0x4d   : > { %v1803_v8 = vsel %vm1795_vm7, %v1786_v58, %v1802_v6  ;;  %v1807_v9 = vsel %vm1795_vm7, %v1789_v60, %v1806_v7  ;;  %v1800_v12 = vsel %vm1794_vm6, %v1797_v62, %v1799_v5  ;;  %v2001_v29 = vshll.u32 %v2858_v41, %v1992_v21 }
  0x4e   : > { %v1804_v13 = vsel %vm1794_vm6, %v1801_v2, %v1803_v8  ;;  %v1808_v14 = vsel %vm1794_vm6, %v1805_v4, %v1807_v9  ;;  %v1816_v22 = vmul.u32 %v1809_v47, %v1800_v12  ;;  %v2004_v31 = vshll.u32 %v2859_v43, %v1992_v21 }
  0x4f   : > { %v3052_v16 = vmul.u32.u64.low %v1809_v47, %v1808_v14  ;;  %v3053_v17 = vmul.u32.u64.high %v1809_v47, %v1808_v14, %v3052_v16  ;;  %v3055_v18 = vmul.u32.u64.low %v1809_v47, %v1804_v13  ;;  %v3056_v19 = vmul.u32.u64.high %v1809_v47, %v1804_v13, %v3055_v18 }
  0x50   : > { %vm2013_vm11 = vcmp.lt.s32.totalorder %v1991_v15, 4  ;;  %v1994_v32 = vshrl.u32 %v2856_v37, %v1993_v25  ;;  %v1996_v33 = vshrl.u32 %v2857_v39, %v1993_v25  ;;  %v1999_v34 = vshrl.u32 %v2858_v41, %v1993_v25 }
  0x51   : > { %vm1818_vm10 = vc.u32 %v3053_v17, %v3055_v18  ;;  %v1819_v30 = vadd.s32 1, %v3056_v19  ;;  %v2002_v35 = vshrl.u32 %v2859_v43, %v1993_v25  ;;  %v2005_v38 = vshrl.u32 %v2860_v45, %v1993_v25 }
  0x52   : > { %v2007_v40 = vshll.u32 %v2860_v45, %v1992_v21  ;;  %v2008_v42 = vshrl.u32 %v2861_v54, %v1993_v25  ;;  %v1997_v46 = vor.u32 %v1996_v33, %v1995_v27  ;;  %v2000_v47 = vor.u32 %v1999_v34, %v1998_v28  ;;  %v1311_v34 = vld [vmem:[%s1310_s2] ss:$0 sm:$0xff]  ;;  %s1434_s2 = scalar_lea.vmem %s3518_s16, %s3570_s26 }
  0x53   : > { %v1820_v36 = vsel %vm1818_vm10, %v1819_v30, %v3056_v19  ;;  %v2003_v49 = vor.u32 %v2002_v35, %v2001_v29  ;;  %v2006_v50 = vor.u32 %v2005_v38, %v2004_v31  ;;  %vm2012_vm12 = vcmp.lt.s32.totalorder %v1991_v15, 3  ;;  %v1362_v35 = vld [vmem:[%s1361_s19] ss:$0 sm:$0xff]  ;;  %s1485_s19 = scalar_lea.vmem %s3517_s15, %s3570_s26 }
  0x54   : > { %v1821_v44 = vadd.s32 %v1820_v36, %v1816_v22  ;;  %v2009_v51 = vor.u32 %v2008_v42, %v2007_v40  ;;  %v2026_v52 = vshll.u32 %v1986_v23, 8  ;;  %vm2011_vm13 = vcmp.lt.s32.totalorder %v1991_v15, 2 }
  0x55   : > { %v2015_v37 = vsel %vm2013_vm11, %v2003_v49, 2102212464  ;;  %v2018_v39 = vsel %vm2010_vm9, %v1997_v46, %v2000_v47  ;;  %v2014_v41 = vsel %vm2010_vm9, %v1994_v32, %v1997_v46  ;;  %v2019_v43 = vsel %vm2013_vm11, %v2006_v50, 920167782 }
  0x56   : > { %v1822_v53 = vadd.s32 536870912, %v1821_v44  ;;  %v2022_v45 = vsel %vm2010_vm9, %v2000_v47, %v2003_v49  ;;  %v2023_v54 = vsel %vm2013_vm11, %v2009_v51, 1326507024  ;;  %v2016_v56 = vsel %vm2012_vm12, %v2000_v47, %v2015_v37 }
  0x57   : > { %v2020_v57 = vsel %vm2012_vm12, %v2003_v49, %v2019_v43  ;;  %v2024_v58 = vsel %vm2012_vm12, %v2006_v50, %v2023_v54  ;;  %v2017_v2 = vsel %vm2011_vm13, %v2014_v41, %v2016_v56  ;;  %v1817_v16 = vadd.s32 %v3055_v18, %v3053_v17  ;;  %v1413_v41 = vld [vmem:[%s1412_s25] ss:$0 sm:$0xff]  ;;  %s3180_s25 = scalar_lea.vmem %s3551_s7, %s3134_s20 }
  0x58   : > { %v3069_v55 = vshrl.u32 %v1822_v53, 30  ;;  %v2021_v59 = vsel %vm2011_vm13, %v2018_v39, %v2020_v57  ;;  %v2025_v60 = vsel %vm2011_vm13, %v2022_v45, %v2024_v58  ;;  %v2033_v8 = vmul.u32 %v2026_v52, %v2017_v2  ;;  %v1336_v53 = vld [vmem:[%s1335_s22] ss:$0 sm:$0xff]  ;;  %s1590_s22 = scalar_lea.vmem %s1587_s29, %s3119_s0 }
  0x59   : > { %v3077_v62 = vmul.u32.u64.low %v2026_v52, %v2025_v60  ;;  %v3078_v63 = vmul.u32.u64.high %v2026_v52, %v2025_v60, %v3077_v62  ;;  %v3081_v4 = vmul.u32.u64.low %v2026_v52, %v2021_v59  ;;  %v3082_v5 = vmul.u32.u64.high %v2026_v52, %v2021_v59, %v3081_v4 }
  0x5a   : > { %v1824_v61 = vshll.u32 %v3069_v55, 30  ;;  %v1312_v25 = vstv %s1309_s3  ;;  %s1334_s3 = sand.u32 3, %s1330_s1   ;;  %s1386_s1 = scalar_lea.vmem %s1383_s24, %s3119_s0  ;;  %v1847_v50 = vsub.s32 4, %v3069_v55  ;;  %vm1980_vm9 = vcmp.lt.s32.totalorder %v3041_v26, 0 }
  0x5b   : > { %vm2035_vm14 = vc.u32 %v3078_v63, %v3081_v4  ;;  %v2036_v9 = vadd.s32 1, %v3082_v5  ;;  %v3122_v33 = vshll.u32 %v1312_v25, 3  ;;  %v1337_v42 = vstv %s1334_s3  ;;  %s3150_s3 = scalar_lea.vmem %s3548_s8, %s3134_s20  ;;  %v1387_v39 = vld [vmem:[%s1386_s1] ss:$0 sm:$0xff]  ;;  %s1437_s24 = scalar_lea.vmem %s1434_s2, %s3119_s0 }
  0x5c   : > { %v1825_v6 = vsub.s32 %v1821_v44, %v1824_v61  ;;  %v3152_v37 = vshll.u32 %v1337_v42, 3  ;;  %s1511_s8 = scalar_lea.vmem %s3516_s14, %s3568_s23  ;;  %v2034_v54 = vadd.s32 %v3081_v4, %v3078_v63  ;;  %v1848_v24 = vsel %vm1763_vm0, %v1847_v50, %v3069_v55  ;;  %v1438_v59 = vld [vmem:[%s1437_s24] ss:$0 sm:$0xff]  ;;  %s1562_s1 = scalar_lea.vmem %s3515_s13, %s3568_s23 }
  0x5d   : > { %v2037_v11 = vsel %vm2035_vm14, %v2036_v9, %v3082_v5  ;;  %v1314_v47 = vshra.s32 %v1311_v34, %v3122_v33  ;;  %v1365_v49 = vshra.s32 %v1362_v35, %v3122_v33  ;;  %v1416_v4 = vshra.s32 %v1413_v41, %v3122_v33  ;;  %s1488_s24 = scalar_lea.vmem %s1485_s19, %s3119_s0  ;;  %s1514_s18 = scalar_lea.vmem %s1511_s8, %s3094_s27  ;;  %v1300_v9 = vld [vmem:[%s3150_s3] sm:$0xff] }
  0x5e   : > { %v1827_v7 = vsub.s32 0, %v1825_v6  ;;  %v2038_v13 = vadd.s32 %v2037_v11, %v2033_v8  ;;  %v1339_v2 = vshra.s32 %v1336_v53, %v3152_v37  ;;  %v1390_v55 = vshra.s32 %v1387_v39, %v3152_v37  ;;  %s1539_s2 = scalar_lea.vmem %s1536_s28, %s3119_s0  ;;  %s1565_s21 = scalar_lea.vmem %s1562_s1, %s3094_s27  ;;  %v3263_v53 = vld [vmem:[%s1590_s22] ss:$0 sm:$0xff] }
  0x5f   : > { %v1315_v56 = vand.u32 255, %v1314_v47  ;;  %v1366_v57 = vand.u32 255, %v1365_v49  ;;  %v3207_v8 = vsub.s32 0, %v3017_v3  ;;  %v1441_v11 = vshra.s32 %v1438_v59, %v3152_v37  ;;  %v1540_v25 = vld [vmem:[%s1539_s2] ss:$0 sm:$0xff]  ;;  %s1616_s1 = scalar_lea.vmem %s1613_s30, %s3094_s27  ;;  %s1638_s2 = scalar_lea.vmem %s3514_s12, %s3570_s26  ;;  %v2695_v59 = vld [vmem:[%s3150_s3 + $0x8] sm:$0xff] }
  0x60   : > { %v2738_v10 = vmin.u32 %v1827_v7, %v1825_v6  ;;  %v2039_v15 = vadd.s32 536870912, %v2038_v13  ;;  %v3272_v43 = vld [vmem:[%s1616_s1] ss:$0 sm:$0xff]  ;;  %vm3276_vm10 = vcmp.le.f32.partialorder %v1978_v48, 0.7853982  ;;  %s3554_s19 = sld [smem:[#allocation32_spill]]  ;;  %s1641_s1 = scalar_lea.vmem %s1638_s2, %s3119_s0 }
  0x61   : > { %vm1318_vm3 = vcmp.ne.s32.totalorder %v1315_v56, 0  ;;  %vm1369_vm4 = vcmp.ne.s32.totalorder %v1366_v57, 0  ;;  %s3555_s30 = sld [smem:[#allocation31_spill]]  ;;  %s3556_s28 = sld [smem:[#allocation30_spill]] }
  0x62   : > { %v1829_v12 = vclz %v2738_v10  ;;  %v3098_v19 = vshrl.u32 %v2039_v15, 30  ;;  %v1351_v10 = vld [vmem:[%s3180_s25] sm:$0xff] }
  0x63   : > { %v1489_v15 = vld [vmem:[%s1488_s24] ss:$0 sm:$0xff]  ;;  %s1689_s24 = scalar_lea.vmem %s3513_s11, %s3570_s26 }
  0x64   : > { %v2739_v14 = vadd.s32 4294967294, %v1829_v12  ;;  %v2041_v18 = vshll.u32 %v3098_v19, 30  ;;  %v1464_v12 = vld [vmem:[%s1463_s5] ss:$0 sm:$0xff]  ;;  %v1492_v34 = vshra.s32 %v1489_v15, %v3152_v37  ;;  %v2064_v42 = vsub.s32 4, %v3098_v19 }
  0x66   : > { %vm2740_vm15 = vcmp.lt.s32.totalorder %v2739_v14, 0  ;;  %v3111_v29 = vsub.s32 %v2038_v13, %v2041_v18  ;;  %v1850_v13 = vsel %vm3170_vm1, 0, %v1848_v24  ;;  %v3222_v18 = vand.u32 255, %v1416_v4  ;;  %s1118_s29 = scalar_lea.vmem %s3554_s19, %s3134_s20  ;;  %s3560_s19 = sld [smem:[#allocation26_spill]] }
  0x67   : > { %v1832_v21 = vsel %vm2740_vm15, 0, %v2739_v14  ;;  %v3216_v14 = vsub.s32 1, %v3017_v3  ;;  %v1467_v3 = vshra.s32 %v1464_v12, %v3122_v33  ;;  %v2065_v56 = vsel %vm1980_vm9, %v2064_v42, %v3098_v19  ;;  %s3291_s22 = scalar_lea.vmem %s3555_s30, %s3134_s20  ;;  %s3310_s5 = scalar_lea.vmem %s3556_s28, %s3134_s20  ;;  %v2705_v4 = vld [vmem:[%s1118_s29 + $0x8] sm:$0xff] }
  0x68   : > { %v1833_v22 = vsub.s32 32, %v1832_v21  ;;  %v1834_v23 = vshll.u32 %v1825_v6, %v1832_v21  ;;  %v1837_v17 = vsub.s32 4294967266, %v1832_v21  ;;  %v2044_v32 = vsub.s32 0, %v3111_v29  ;;  %s1740_s28 = scalar_lea.vmem %s3512_s10, %s3570_s26  ;;  %s3557_s30 = sld [smem:[#allocation29_spill]] }
  0x69   : > { %vm1420_vm7 = vcmp.ne.s32.totalorder %v3222_v18, 0  ;;  %v3254_v47 = vand.u32 255, %v1467_v3  ;;  %s1692_s26 = scalar_lea.vmem %s1689_s24, %s3119_s0 }
  0x6a   : > { %v1835_v27 = vshrl.u32 %v1817_v16, %v1833_v22  ;;  %v1838_v28 = vadd.s32 127, %v1837_v17  ;;  %v2746_v40 = vmin.u32 %v2044_v32, %v3111_v29  ;;  %v1515_v16 = vld [vmem:[%s1514_s18] ss:$0 sm:$0xff]  ;;  %v3220_v17 = vand.u32 255, %v1390_v55  ;;  %s1715_s18 = scalar_lea.vmem %s3512_s10, %s3568_s23 }
  0x6b   : > { %v3237_v32 = vand.u32 255, %v1441_v11  ;;  %v1518_v35 = vshra.s32 %v1515_v16, %v3122_v33  ;;  %v1402_v55 = vld [vmem:[%s1118_s29] sm:$0xff] }
  0x6c   : > { %v1836_v30 = vor.u32 %v1835_v27, %v1834_v23  ;;  %v1839_v31 = vshll.u32 %v1838_v28, 23  ;;  %v2046_v46 = vclz %v2746_v40  ;;  %v3218_v23 = vand.u32 255, %v1339_v2  ;;  %v1566_v27 = vld [vmem:[%s1565_s21] ss:$0 sm:$0xff]  ;;  %s1664_s21 = scalar_lea.vmem %s3513_s11, %s3568_s23 }
  0x6d   : > { %v1957_v28 = vadd.s32 3, %v1850_v13  ;;  %vm1394_vm6 = vcmp.ne.s32.totalorder %v3220_v17, 0  ;;  %vm1445_vm8 = vcmp.ne.s32.totalorder %v3237_v32, 0  ;;  %v2067_v2 = vsel %vm3276_vm10, 0, %v2065_v56  ;;  %s1667_s23 = scalar_lea.vmem %s1664_s21, %s3094_s27  ;;  %s1743_s21 = scalar_lea.vmem %s1740_s28, %s3119_s0  ;;  %v2715_v17 = vld [vmem:[%s3310_s5 + $0x8] sm:$0xff] }
  0x6e   : > { %v1840_v36 = vor.u32 4788187, %v1839_v31  ;;  %v1843_v38 = vcvt.s32.f32 %v1836_v30  ;;  %v2747_v52 = vadd.s32 4294967294, %v2046_v46  ;;  %v3235_v31 = vsel %vm1318_vm3, %v1300_v9, %v2985_v1  ;;  %s3343_s7 = scalar_lea.vmem %s3557_s30, %s3134_s20  ;;  %v1668_v3 = vld [vmem:[%s1667_s23] ss:$0 sm:$0xff]  ;;  %s1226_s28 = scalar_lea.vmem %s3560_s19, %s3134_s20 }
  0x6f   : > { %vm1343_vm5 = vcmp.ne.s32.totalorder %v3218_v23, 0  ;;  %v3251_v46 = vand.u32 3, %v1850_v13  ;;  %v3256_v49 = vand.u32 3, %v1957_v28  ;;  %v2174_v13 = vadd.s32 3, %v2067_v2  ;;  %v1504_v23 = vld [vmem:[%s3310_s5] sm:$0xff] }
  0x70   : > { %v1841_v44 = vand.u32 2147483647, %v1840_v36  ;;  %vm2748_vm2 = vcmp.lt.s32.totalorder %v2747_v52, 0  ;;  %v3242_v36 = vsel %vm1369_vm4, %v1351_v10, %v2985_v1  ;;  %v3355_v11 = vsel %vm1343_vm5, %v2695_v59, %v2985_v1  ;;  %v1555_v18 = vld [vmem:[%s3343_s7] sm:$0xff] }
  0x71   : > { %v2049_v58 = vsel %vm2748_vm2, 0, %v2747_v52  ;;  %v3261_v52 = vand.u32 255, %v1518_v35  ;;  %vm1856_vm11 = vcmp.eq.s32.totalorder %v3251_v46, 0  ;;  %vm1859_vm12 = vcmp.eq.s32.totalorder %v3251_v46, 2  ;;  %v1693_v32 = vld [vmem:[%s1692_s26] ss:$0 sm:$0xff] }
  0x72   : > { %v1844_v51 = vmul.f32 %v1843_v38, %v1841_v44  ;;  %v2050_v61 = vsub.s32 32, %v2049_v58  ;;  %v2051_v62 = vshll.u32 %v3111_v29, %v2049_v58  ;;  %v2054_v63 = vsub.s32 4294967266, %v2049_v58  ;;  %s3561_s26 = sld [smem:[#allocation38_spill]] (%p3012_p4) }
  0x73   : > { %v1543_v38 = vshra.s32 %v1540_v25, %v3152_v37  ;;  %v1569_v44 = vshra.s32 %v1566_v27, %v3122_v33  ;;  %vm1960_vm13 = vcmp.eq.s32.totalorder %v3256_v49, 0  ;;  %vm1963_vm14 = vcmp.eq.s32.totalorder %v3256_v49, 2 }
  0x74   : > { %v1845_v45 = vxor.u32 2147483648, %v1844_v51  ;;  %v2052_v6 = vshrl.u32 %v2034_v54, %v2050_v61  ;;  %v2055_v7 = vadd.s32 127, %v2054_v63  ;;  %v1594_v61 = vshra.s32 %v3263_v53, %v3152_v37 }
  0x75   : > { %v3270_v41 = vand.u32 255, %v1543_v38  ;;  %v3293_v48 = vand.u32 255, %v1569_v44  ;;  %vm1855_vm15 = vcmp.lt.s32.totalorder %v3251_v46, 2  ;;  %v3367_v15 = vsel %vm1420_vm7, %v1402_v55, %v2985_v1 }
  0x76   : > { %v1846_v60 = vsel %vm1763_vm0, %v1845_v45, %v1844_v51  ;;  %v2053_v21 = vor.u32 %v2052_v6, %v2051_v62  ;;  %v2056_v22 = vshll.u32 %v2055_v7, 23  ;;  %v3259_v51 = vand.u32 255, %v1492_v34  ;;  %v1642_v6 = vld [vmem:[%s1641_s1] ss:$0 sm:$0xff]  ;;  %s1718_s1 = scalar_lea.vmem %s1715_s18, %s3094_s27 }
  0x77   : > { %v1849_v5 = vsel %vm3170_vm1, %v3037_v20, %v1846_v60  ;;  %v2700_v60 = vld [vmem:[%s3180_s25 + $0x8] sm:$0xff]  ;;  %v1620_v62 = vshra.s32 %v3272_v43, %v3122_v33  ;;  %vm1959_vm0 = vcmp.lt.s32.totalorder %v3256_v49, 2  ;;  %vm1853_vm1 = vweird.f32 %v3037_v20  ;;  %v1719_v38 = vld [vmem:[%s1718_s1] ss:$0 sm:$0xff]  ;;  %s3559_s25 = sld [smem:[#allocation27_spill]] }
  0x78   : > { %2824 = vcosq.f32 %v1849_v5  ;;  %v2057_v29 = vor.u32 4788187, %v2056_v22  ;;  %v2060_v30 = vcvt.s32.f32 %v2053_v21  ;;  %v3360_v12 = vsel %vm1394_vm6, %v2700_v60, %v2985_v1  ;;  %v1453_v21 = vld [vmem:[%s3291_s22] sm:$0xff]  ;;  %v2710_v22 = vld [vmem:[%s3291_s22 + $0x8] sm:$0xff]  ;;  %s3558_s22 = sld [smem:[#allocation28_spill]] }
  0x79   : > { %2826 = vsinq.f32 %v1849_v5  ;;  %v3372_v16 = vsel %vm1445_vm8, %v2705_v4, %v2985_v1  ;;  %vm1471_vm2 = vcmp.ne.s32.totalorder %v3254_v47, 0  ;;  %vm1496_vm3 = vcmp.ne.s32.totalorder %v3259_v51, 0 }
  0x7a   : > { %v2058_v40 = vand.u32 2147483647, %v2057_v29  ;;  %vm1522_vm4 = vcmp.ne.s32.totalorder %v3261_v52, 0  ;;  %v1645_v25 = vshra.s32 %v1642_v6, %v3152_v37  ;;  %vm1547_vm5 = vcmp.ne.s32.totalorder %v3270_v41, 0 }
  0x7b   : > { %vm1573_vm6 = vcmp.ne.s32.totalorder %v3293_v48, 0  ;;  %v1595_v29 = vand.u32 255, %v1594_v61  ;;  %vm2070_vm7 = vweird.f32 %v3041_v26  ;;  %v3397_v34 = vsel %vm1471_vm2, %v1453_v21, %v2985_v1 }
  0x7c   : > { %v2061_v50 = vmul.f32 %v2060_v30, %v2058_v40  ;;  %v3391_v30 = vand.u32 255, %v1620_v62  ;;  %v3402_v35 = vsel %vm1496_vm3, %v2710_v22, %v2985_v1  ;;  %v1744_v40 = vld [vmem:[%s1743_s21] ss:$0 sm:$0xff]  ;;  %v2071_v42 = vand.u32 3, %v2067_v2 }
  0x7d   : > { %v2175_v44 = vand.u32 3, %v2174_v13  ;;  %v3407_v46 = vsel %vm1522_vm4, %v1504_v23, %v2985_v1  ;;  %v1671_v49 = vshra.s32 %v1668_v3, %v3122_v33  ;;  %v3417_v51 = vsel %vm1547_vm5, %v2715_v17, %v2985_v1  ;;  %s1208_s18 = scalar_lea.vmem %s3559_s25, %s3134_s20  ;;  %v1708_v3 = vld [vmem:[%s1226_s28] sm:$0xff] }
  0x7e   : > { %v2062_v54 = vxor.u32 2147483648, %v2061_v50  ;;  %v3422_v53 = vsel %vm1573_vm6, %v1555_v18, %v2985_v1  ;;  %v1646_v52 = vand.u32 255, %v1645_v25  ;;  %vm1598_vm8 = vcmp.ne.s32.totalorder %v1595_v29, 0  ;;  %s1190_s5 = scalar_lea.vmem %s3558_s22, %s3134_s20  ;;  %v2730_v22 = vld [vmem:[%s1208_s18 + $0x8] sm:$0xff]  ;;  %s1053_s20 = sand.u32 1, %s2846_s4  }
  0x7f   : > { %v1722_v20 = vshra.s32 %v1719_v38, %v3122_v33  ;;  %v1747_v43 = vshra.s32 %v1744_v40, %v3152_v37  ;;  %v1606_v55 = vld [vmem:[%s1190_s5] sm:$0xff]  ;;  %v2735_v29 = vld [vmem:[%s1226_s28 + $0x8] sm:$0xff]  ;;  %s2669_s2 = sshll.u32 %s1053_s20, 5  ;;  %s2785_s4 = sshll.u32 (%p3012_p4), %s3000_s9, 4 }
  0x80   : > { %v2063_v58 = vsel %vm1980_vm9, %v2062_v54, %v2061_v50  ;;  %vm1624_vm9 = vcmp.ne.s32.totalorder %v3391_v30, 0  ;;  %s1055_s29 = scalar_lea.vmem [#allocation12], %s2669_s2  ;;  %s2335_s1 = scalar_lea.vmem (%p3012_p4), %s3561_s26, %s2785_s4 }
  0x81   : > { %v2066_v63 = vsel %vm3276_vm10, %v3041_v26, %v2063_v58  ;;  %vm2076_vm10 = vcmp.eq.s32.totalorder %v2071_v42, 2  ;;  %v1723_v60 = vand.u32 255, %v1722_v20  ;;  %v1748_v4 = vand.u32 255, %v1747_v43 }
  0x82   : > { %v2825_v39 = vpop.eup %2824  ;;  %2828 = vcosq.f32 %v2066_v63  ;;  %v1625_v25 = vsel %vm1624_vm9, %v1606_v55, %v2985_v1 }
  0x83   : > { %v2827_v57 = vpop.eup %2826  ;;  %v1860_v24 = vxor.u32 2147483648, %v2825_v39  ;;  %2830 = vsinq.f32 %v2066_v63  ;;  %vm1726_vm3 = vcmp.ne.s32.totalorder %v1723_v60, 0  ;;  %vm1751_vm4 = vcmp.ne.s32.totalorder %v1748_v4, 0 }
  0x84   : > { %v1857_v19 = vxor.u32 2147483648, %v2827_v57  ;;  %v1752_v20 = vsel %vm1751_vm4, %v2735_v29, %v2985_v1 }
  0x85   : > { %v1861_v5 = vsel %vm1859_vm12, %v1860_v24, %v2827_v57  ;;  %v1965_v10 = vsel %vm1963_vm14, %v1860_v24, %v2827_v57  ;;  %v1672_v57 = vand.u32 255, %v1671_v49  ;;  %vm2073_vm12 = vcmp.eq.s32.totalorder %v2071_v42, 0  ;;  %v2720_v24 = vld [vmem:[%s3343_s7 + $0x8] sm:$0xff] }
  0x86   : > { %v1858_v7 = vsel %vm1856_vm11, %v2825_v39, %v1857_v19  ;;  %v1962_v9 = vsel %vm1960_vm13, %v2825_v39, %v1857_v19  ;;  %v1696_v39 = vshra.s32 %v1693_v32, %v3152_v37  ;;  %vm2180_vm11 = vcmp.eq.s32.totalorder %v2175_v44, 2 }
  0x87   : > { %v1862_v27 = vsel %vm1855_vm15, %v1858_v7, %v1861_v5  ;;  %v1966_v28 = vsel %vm1959_vm0, %v1962_v9, %v1965_v10  ;;  %vm2177_vm13 = vcmp.eq.s32.totalorder %v2175_v44, 0  ;;  %vm2072_vm14 = vcmp.lt.s32.totalorder %v2071_v42, 2  ;;  %v2725_v7 = vld [vmem:[%s1190_s5 + $0x8] sm:$0xff]  ;;  %v1657_v9 = vld [vmem:[%s1208_s18] sm:$0xff] }
  0x88   : > { %v1863_v47 = vsel %vm1853_vm1, nan, %v1862_v27  ;;  %v1967_v50 = vsel %vm1853_vm1, nan, %v1966_v28  ;;  %vm2176_vm15 = vcmp.lt.s32.totalorder %v2175_v44, 2  ;;  %vm1649_vm0 = vcmp.ne.s32.totalorder %v1646_v52, 0 }
  0x89   : > { %v1968_v45 = vsub.f32 1.0, %v1863_v47  ;;  %v1969_v54 = vmul.f32 1.7320508, %v1967_v50  ;;  %v1972_v33 = vmul.f32 2.0, %v1863_v47  ;;  %v1697_v19 = vand.u32 255, %v1696_v39 }
  0x8a   : > { %v1599_v2 = vsel %vm1598_vm8, %v2720_v24, %v2985_v1  ;;  %vm1675_vm1 = vcmp.ne.s32.totalorder %v1672_v57, 0  ;;  %v1650_v26 = vsel %vm1649_vm0, %v2725_v7, %v2985_v1  ;;  %v1727_v49 = vsel %vm1726_vm3, %v1708_v3, %v2985_v1 }
  0x8b   : > { %v1970_v61 = vsub.f32 %v1968_v45, %v1969_v54  ;;  %v1973_v10 = vadd.f32 1.0, %v1972_v33  ;;  %vm1700_vm2 = vcmp.ne.s32.totalorder %v1697_v19, 0  ;;  %v1975_v28 = vadd.f32 %v1969_v54, %v1968_v45 }
  0x8c   : > { %v2829_v41 = vpop.eup %2828  ;;  %v1676_v42 = vsel %vm1675_vm1, %v1657_v9, %v2985_v1  ;;  %v1701_v44 = vsel %vm1700_vm2, %v2730_v22, %v2985_v1 }
  0x8d   : > { %v2831_v56 = vpop.eup %2830  ;;  %v2077_v48 = vxor.u32 2147483648, %v2829_v41  ;;  %v1971_v27 = vmul.f32 0.33333334, %v1970_v61  ;;  %v1974_v30 = vmul.f32 0.33333334, %v1973_v10 }
  0x8e   : > { %v2074_v37 = vxor.u32 2147483648, %v2831_v56  ;;  %v1976_v43 = vmul.f32 0.33333334, %v1975_v28 }
  0x8f   : > { %v2078_v58 = vsel %vm2076_vm10, %v2077_v48, %v2831_v56  ;;  %v2182_v59 = vsel %vm2180_vm11, %v2077_v48, %v2831_v56  ;;  %v2251_v52 = vrot.slane %v1971_v27, %v3216_v14  ;;  %v2276_v33 = vrot.slane %v1974_v30, %v3207_v8 }
  0x90   : > { %v2075_v62 = vsel %vm2073_vm12, %v2829_v41, %v2074_v37  ;;  %v2179_v63 = vsel %vm2177_vm13, %v2829_v41, %v2074_v37  ;;  %v2247_v41 = vrot.slane %v1971_v27, %v3207_v8  ;;  %v2280_v37 = vrot.slane %v1974_v30, %v3216_v14 }
  0x91   : > { %v2079_v5 = vsel %vm2072_vm14, %v2075_v62, %v2078_v58  ;;  %v2183_v6 = vsel %vm2176_vm15, %v2179_v63, %v2182_v59 }
  0x92   : > { %v2080_v13 = vsel %vm2070_vm7, nan, %v2079_v5  ;;  %v2184_v21 = vsel %vm2070_vm7, nan, %v2183_v6 }
  0x93   : > { %v2185_v23 = vsub.f32 1.0, %v2080_v13  ;;  %v2186_v17 = vmul.f32 1.7320508, %v2184_v21  ;;  %v2189_v18 = vmul.f32 2.0, %v2080_v13 }
  0x95   : > { %v2187_v32 = vsub.f32 %v2185_v23, %v2186_v17  ;;  %v2190_v38 = vadd.f32 1.0, %v2189_v18  ;;  %v2192_v40 = vadd.f32 %v2186_v17, %v2185_v23 }
  0x97   : > { %v2188_v47 = vmul.f32 0.33333334, %v2187_v32  ;;  %v2191_v50 = vmul.f32 0.33333334, %v2190_v38  ;;  %v2193_v39 = vmul.f32 0.33333334, %v2192_v40 }
  0x99   : > { %v2200_v45 = vrot.slane %v2188_v47, %v3207_v8  ;;  %v2204_v54 = vrot.slane %v2188_v47, %v3216_v14  ;;  %v2215_v56 = vrot.slane %v2191_v50, %v3207_v8  ;;  %v2219_v57 = vrot.slane %v2191_v50, %v3216_v14 }
  0x9a   : > { %v2232_v48 = vrot.slane %v2193_v39, %v3207_v8  ;;  %v2236_v24 = vrot.slane %v2193_v39, %v3216_v14 }
  0x9b   : > { %v2207_v19 = vmul.f32 %v2200_v45, %v3235_v31  ;;  %v2208_v58 = vmul.f32 %v2204_v54, %v3355_v11  ;;  %v2222_v59 = vmul.f32 %v2215_v56, %v3242_v36  ;;  %v2223_v60 = vmul.f32 %v2219_v57, %v3360_v12 }
  0x9c   : > { %v2239_v61 = vmul.f32 %v2232_v48, %v3367_v15  ;;  %v2240_v62 = vmul.f32 %v2236_v24, %v3372_v16  ;;  %v2258_v63 = vmul.f32 %v2200_v45, %v3397_v34  ;;  %v2259_v55 = vmul.f32 %v2204_v54, %v3402_v35 }
  0x9d   : > { %v2224_v4 = vadd.f32 %v2222_v59, %v2207_v19  ;;  %v2225_v5 = vadd.f32 %v2223_v60, %v2208_v58  ;;  %v2262_v6 = vmul.f32 %v2215_v56, %v3407_v46  ;;  %v2263_v31 = vmul.f32 %v2219_v57, %v3417_v51 }
  0x9e   : > { %v2268_v11 = vmul.f32 %v2232_v48, %v3422_v53  ;;  %v2269_v7 = vmul.f32 %v2236_v24, %v1599_v2  ;;  %v2289_v36 = vmul.f32 %v2200_v45, %v1625_v25  ;;  %v2290_v9 = vmul.f32 %v2204_v54, %v1650_v26 }
  0x9f   : > { %v2241_v12 = vadd.f32 %v2239_v61, %v2224_v4  ;;  %v2242_v15 = vadd.f32 %v2240_v62, %v2225_v5  ;;  %v2264_v10 = vadd.f32 %v2262_v6, %v2258_v63  ;;  %v2265_v16 = vadd.f32 %v2263_v31, %v2259_v55 }
  0xa0   : > { %v2293_v13 = vmul.f32 %v2215_v56, %v1676_v42  ;;  %v2294_v34 = vmul.f32 %v2219_v57, %v1701_v44  ;;  %v2299_v21 = vmul.f32 %v2232_v48, %v1727_v49  ;;  %v2300_v35 = vmul.f32 %v2236_v24, %v1752_v20 }
  0xa1   : > { %v2254_v22 = vmul.f32 %v2247_v41, %v2241_v12  ;;  %v2255_v23 = vmul.f32 %v2251_v52, %v2242_v15  ;;  %v2270_v17 = vadd.f32 %v2268_v11, %v2264_v10  ;;  %v2271_v46 = vadd.f32 %v2269_v7, %v2265_v16 }
  0xa2   : > { %v2295_v18 = vadd.f32 %v2293_v13, %v2289_v36  ;;  %v2296_v51 = vadd.f32 %v2294_v34, %v2290_v9  ;;  %v2307_v53 = vrot.slane %v1976_v43, %v3207_v8  ;;  %v2311_v2 = vrot.slane %v1976_v43, %v3216_v14 }
  0xa3   : > { %v2283_v25 = vmul.f32 %v2276_v33, %v2270_v17  ;;  %v2284_v3 = vmul.f32 %v2280_v37, %v2271_v46 }
  0xa4   : > { %v2301_v27 = vadd.f32 %v2299_v21, %v2295_v18  ;;  %v2302_v28 = vadd.f32 %v2300_v35, %v2296_v51 }
  0xa5   : > { %v2285_v29 = vadd.f32 %v2283_v25, %v2254_v22  ;;  %v2286_v32 = vadd.f32 %v2284_v3, %v2255_v23 }
  0xa6   : > { %v2314_v38 = vmul.f32 %v2307_v53, %v2301_v27  ;;  %v2315_v40 = vmul.f32 %v2311_v2, %v2302_v28 }
  0xa7   : > { %2332 = sbr.rel (!%p3012_p4) target bundleno = 182 (0xb6), region = 104 }
  0xa8   : > { %v2316_v26 = vadd.f32 %v2314_v38, %v2285_v29  ;;  %v2317_v42 = vadd.f32 %v2315_v40, %v2286_v32 }
  0xaa   : > { %v2318_v44 = vmul.f32 -0.41614684, %v2316_v26  ;;  %v2319_v30 = vmul.f32 -0.41614684, %v2317_v42  ;;  %v2322_v49 = vmul.f32 -0.9092974, %v2316_v26 }
  0xab   : > { %v2323_v47 = vmul.f32 -0.9092974, %v2317_v42 }
  0xac   : > { %2320 = vst [vmem:[%s1055_s29] sm:$0xff] %v2318_v44  ;;  %2321 = vst [vmem:[%s1055_s29 + $0x8] sm:$0xff] %v2319_v30 }
  0xad   : > { %2324 = vst [vmem:[%s1055_s29 + $0x10] sm:$0xff] %v2322_v49  ;;  %2325 = vst [vmem:[%s1055_s29 + $0x18] sm:$0xff] %v2323_v47 }
  0xb3   : > { %v2348_v8 = vld [vmem:[%s1055_s29] sm:$0xff]  ;;  %v2350_v14 = vld [vmem:[%s1055_s29 + $0x8] sm:$0xff] }
  0xb4   : > { %v2352_v50 = vld [vmem:[%s1055_s29 + $0x10] sm:$0xff]  ;;  %v2354_v39 = vld [vmem:[%s1055_s29 + $0x18] sm:$0xff]  ;;  %2349 = vst [vmem:[%s2335_s1] sm:$0xff] %v2348_v8  ;;  %2351 = vst [vmem:[%s2335_s1 + $0x8] sm:$0xff] %v2350_v14 }
  0xb5   : > { %2353 = vst [vmem:[%s2335_s1 + $0x20] sm:$0xff] %v2352_v50  ;;  %2355 = vst [vmem:[%s2335_s1 + $0x28] sm:$0xff] %v2354_v39 }
  0xb6 PF: > { %s3562_s23 = sld [smem:[#allocation24_spill]]  ;;  %s3563_s4 = sld [smem:[#allocation23_spill]] }
  0xb7   : > { %s3564_s0 = sld [smem:[#allocation25_spill]] }
  0xbc   : > { %p40_p10 = scmp.ge.s32.totalorder %s3562_s23, 4  }
  0xbe   :  { %42 = sbr.rel (!%p40_p10) target bundleno = 16 (0x10), region = 269 }

</bundles_post_ra>
